<compile_context>
chip_gen: v7x
topology: tpu7x:2x2x1
jax: 0.10.0
libtpu: 0.0.40
codegen_flags: <defaults>
</compile_context>

<pallas_src>
import jax
import jax.numpy as jnp
from jax.experimental import pallas as pl
from jax.experimental.pallas import tpu as pltpu


def _predicate_head_kernel(h1_ref, h2_ref, w_ref, b_ref, o_ref):
    """Fused: sigmoid((h1 + h2) @ W + b) for one [TM, H] row tile.

    h1_ref, h2_ref : [TM, H]  row tiles of the two selected hidden-state layers
    w_ref          : [H, C]   linear weight (pre-transposed), VMEM-resident
    b_ref          : [1, C]   linear bias, VMEM-resident
    o_ref          : [TM, C]  sigmoid probabilities for this row tile
    """
    summed = h1_ref[...] + h2_ref[...]                         # stack + sum(dim=0)
    logits = jnp.dot(summed, w_ref[...],
                     preferred_element_type=jnp.float32)       # MXU matmul, f32 acc
    logits = logits + b_ref[...].astype(jnp.float32)           # bias broadcast
    o_ref[...] = jax.nn.sigmoid(logits).astype(o_ref.dtype)    # elementwise sigmoid


def predicate_identifier_forward(hidden_states, weight, bias, *, tm=512):
    """JAX/Pallas equivalent of PredicateIdentifier.forward (post-transformer).

    hidden_states : [L, B, S, H] stacked transformer hidden states
    weight        : [C, H]  (PyTorch nn.Linear layout)
    bias          : [C]
    returns       : squeeze(sigmoid((hidden_states[-4] + hidden_states[-3]) @ W.T + b))
    """
    L, B, S, H = hidden_states.shape
    C = weight.shape[0]
    M = B * S

    # Free, contiguous reshape: the kernel reads layers L-4 / L-3 directly from
    # this stacked buffer (no materialized slice copies).
    hs = hidden_states.reshape(L, M, H)
    w_t = weight.T                      # [H, C] (tiny, negligible copy)
    b2d = bias.reshape(1, C)

    itemsize = jnp.dtype(hs.dtype).itemsize

    # Row-tile size: multiple of 8, capped both by `tm` and by a conservative
    # VMEM budget (2 layer tiles x 2 pipeline buffers must stay well under the
    # scoped limit on every TPU generation).
    vmem_budget = 24 * 1024 * 1024
    tm_vmem = max(8, (vmem_budget // (4 * H * itemsize)) // 8 * 8)
    TM = M if M <= tm else min(tm, tm_vmem)
    grid = (pl.cdiv(M, TM),)

    layer_a = L - 4
    layer_b = L - 3

    cost = pl.CostEstimate(
        flops=2 * M * H * C + M * H,
        transcendentals=M * C,
        bytes_accessed=2 * M * H * itemsize + M * C * 4 + H * C * itemsize + C * 4,
    )

    out = pl.pallas_call(
        _predicate_head_kernel,
        out_shape=jax.ShapeDtypeStruct((M, C), jnp.float32),
        grid_spec=pltpu.PrefetchScalarGridSpec(
            num_scalar_prefetch=0,
            grid=grid,
            in_specs=[
                # Squeezed layer dim: kernel sees a [TM, H] tile of layer -4 / -3.
                pl.BlockSpec((None, TM, H), lambda i: (layer_a, i, 0)),
                pl.BlockSpec((None, TM, H), lambda i: (layer_b, i, 0)),
                # Weight / bias stay resident across all row tiles.
                pl.BlockSpec((H, C), lambda i: (0, 0)),
                pl.BlockSpec((1, C), lambda i: (0, 0)),
            ],
            out_specs=pl.BlockSpec((TM, C), lambda i: (i, 0)),
        ),
        compiler_params=pltpu.CompilerParams(
            dimension_semantics=("parallel",),      # shard row tiles across TCs on v7x
            vmem_limit_bytes=32 * 1024 * 1024,      # safe headroom on v5e/v6e/v7x
        ),
        cost_estimate=cost,
    )(hs, hs, w_t, b2d)

    # Match torch's .squeeze(): drop size-1 dims of the [B, S, C] result.
    return jnp.squeeze(out.reshape(B, S, C))


if __name__ == "__main__":
    # Small, module-consistent shapes: 13 "BERT" hidden-state layers,
    # batch=2, seq=8, hidden=32, classes=4.
    L, B, S, H, C = 13, 2, 8, 32, 4

    key = jax.random.PRNGKey(0)
    k_hs, k_w, k_b = jax.random.split(key, 3)

    hidden_states = jax.random.normal(k_hs, (L, B, S, H), dtype=jnp.float32)
    weight = jax.random.normal(k_w, (C, H), dtype=jnp.float32) * 0.1
    bias = jax.random.normal(k_b, (C,), dtype=jnp.float32) * 0.1

    out = predicate_identifier_forward(hidden_states, weight, bias)
    out = jax.block_until_ready(out)

    # Reference check in plain JAX (same math as the PyTorch forward tail).
    ref = jnp.squeeze(jax.nn.sigmoid(
        (hidden_states[-4] + hidden_states[-3]) @ weight.T + bias))
    assert out.shape == ref.shape, (out.shape, ref.shape)
    assert jnp.allclose(out, ref, atol=1e-5, rtol=1e-5)

    print("KERNEL_OK")
</pallas_src>

<mosaic_0001>
module attributes {stable_mosaic.version = 11 : i64} {
  func.func @_predicate_head_kernel(%arg0: i32, %arg1: memref<1x16x32xf32, #tpu.memory_space<vmem>>, %arg2: memref<1x16x32xf32, #tpu.memory_space<vmem>>, %arg3: memref<32x4xf32, #tpu.memory_space<vmem>>, %arg4: memref<1x4xf32, #tpu.memory_space<vmem>>, %arg5: memref<16x4xf32, #tpu.memory_space<vmem>>) attributes {dimension_semantics = [#tpu.dimension_semantics<parallel>], iteration_bounds = array<i64: 1>, scalar_prefetch = 0 : i64, scratch_operands = 0 : i64, tpu.core_type = #tpu.core_type<tc>, window_params = [{transform_indices = @transform_0, window_bounds = array<i64: 1, 16, 32>}, {transform_indices = @transform_1, window_bounds = array<i64: 1, 16, 32>}, {pipeline_mode = #tpu.pipeline_mode<synchronous>, transform_indices = @transform_2, window_bounds = array<i64: 32, 4>}, {pipeline_mode = #tpu.pipeline_mode<synchronous>, transform_indices = @transform_3, window_bounds = array<i64: 1, 4>}, {transform_indices = @transform_4, window_bounds = array<i64: 16, 4>}]} {
    %c0 = arith.constant 0 : index
    %c0_0 = arith.constant 0 : index
    %c0_1 = arith.constant 0 : index
    %0 = vector.load %arg1[%c0, %c0_0, %c0_1] : memref<1x16x32xf32, #tpu.memory_space<vmem>>, vector<1x16x32xf32>
    %1 = vector.shape_cast %0 : vector<1x16x32xf32> to vector<16x32xf32>
    %c0_2 = arith.constant 0 : index
    %c0_3 = arith.constant 0 : index
    %c0_4 = arith.constant 0 : index
    %2 = vector.load %arg2[%c0_2, %c0_3, %c0_4] : memref<1x16x32xf32, #tpu.memory_space<vmem>>, vector<1x16x32xf32>
    %3 = vector.shape_cast %2 : vector<1x16x32xf32> to vector<16x32xf32>
    %4 = arith.addf %1, %3 : vector<16x32xf32>
    %c0_5 = arith.constant 0 : index
    %c0_6 = arith.constant 0 : index
    %5 = vector.load %arg3[%c0_5, %c0_6] : memref<32x4xf32, #tpu.memory_space<vmem>>, vector<32x4xf32>
    %cst = arith.constant dense<0.000000e+00> : vector<16x4xf32>
    %6 = tpu.matmul %4, %5, %cst {dimension_numbers = #tpu.dot_dimension_numbers<[1], [0], [0], [1], [0, 0, 1, 1], [], []>} : vector<16x32xf32>, vector<32x4xf32>, vector<16x4xf32> -> vector<16x4xf32>
    %c0_7 = arith.constant 0 : index
    %c0_8 = arith.constant 0 : index
    %7 = vector.load %arg4[%c0_7, %c0_8] : memref<1x4xf32, #tpu.memory_space<vmem>>, vector<1x4xf32>
    %8 = vector.broadcast %7 : vector<1x4xf32> to vector<16x4xf32>
    %9 = arith.addf %6, %8 : vector<16x4xf32>
    %10 = arith.negf %9 : vector<16x4xf32>
    %11 = math.exp %10 : vector<16x4xf32>
    %cst_9 = arith.constant 1.000000e+00 : f32
    %12 = vector.broadcast %cst_9 : f32 to vector<16x4xf32>
    %13 = arith.addf %12, %11 : vector<16x4xf32>
    %14 = arith.divf %12, %13 : vector<16x4xf32>
    %c0_10 = arith.constant 0 : index
    %c0_11 = arith.constant 0 : index
    %15 = vector.load %arg5[%c0_10, %c0_11] : memref<16x4xf32, #tpu.memory_space<vmem>>, vector<16x4xf32>
    tpu.vector_store %arg5[%c0_10, %c0_11], %14 {strides = array<i32>} : memref<16x4xf32, #tpu.memory_space<vmem>>, vector<16x4xf32>,
    return
  }
  func.func @transform_0(%arg0: i32) -> (i32, i32, i32) {
    %c9_i32 = arith.constant 9 : i32
    %c0_i32 = arith.constant 0 : i32
    %c0_i32_0 = arith.constant 0 : i32
    return %c9_i32, %arg0, %c0_i32 : i32, i32, i32
  }
  func.func @transform_1(%arg0: i32) -> (i32, i32, i32) {
    %c10_i32 = arith.constant 10 : i32
    %c0_i32 = arith.constant 0 : i32
    %c0_i32_0 = arith.constant 0 : i32
    return %c10_i32, %arg0, %c0_i32 : i32, i32, i32
  }
  func.func @transform_2(%arg0: i32) -> (i32, i32) {
    %c0_i32 = arith.constant 0 : i32
    %c0_i32_0 = arith.constant 0 : i32
    %c0_i32_1 = arith.constant 0 : i32
    return %c0_i32, %c0_i32_0 : i32, i32
  }
  func.func @transform_3(%arg0: i32) -> (i32, i32) {
    %c0_i32 = arith.constant 0 : i32
    %c0_i32_0 = arith.constant 0 : i32
    %c0_i32_1 = arith.constant 0 : i32
    return %c0_i32, %c0_i32_0 : i32, i32
  }
  func.func @transform_4(%arg0: i32) -> (i32, i32) {
    %c0_i32 = arith.constant 0 : i32
    %c0_i32_0 = arith.constant 0 : i32
    return %arg0, %c0_i32 : i32, i32
  }
}

</mosaic_0001>

<bundles_post_ra>
// kernel: tpu_custom_call.1
= control target key start
LH: loop header
LB: loop body
LE: loop exit
PB: predicated region body
PF: predicated region fallthrough
CT: control target
= control target key end

     0   :  { %9 = vsyncpa [#allocation3], 0  ;;  %s337_s0 = inlined_call_operand.hbm [shape: f32[13,16,32], index: 0, kind: input, shape index: {}]   ;;  %s338_s1 = inlined_call_operand.hbm [shape: f32[13,16,32], index: 1, kind: input, shape index: {}]   ;;  %s339_s2 = inlined_call_operand.vmem [shape: f32[32,4], index: 2, kind: input, shape index: {}]   ;;  %s340_s3 = inlined_call_operand.vmem [shape: f32[1,4], index: 3, kind: input, shape index: {}]   ;;  %s341_s4 = inlined_call_operand.vmem [shape: f32[16,4], index: 4, kind: output, shape index: {}]  }
   0x1   :  { %s16_s17 = scalar_lea.hbm %s337_s0, 2304 }
   0x2   :  { %10 = vsyncpa [#allocation5], 0  ;;  %s263_s18 = smov [#allocation2]   ;;  %s233_s22 = scalar_lea.hbm %s337_s0, 2560 }
   0x3   :  { %s17_s19 = sshll.u32 %s263_s18, 4  ;;  %p210_p0 = scmp.ne.s32.totalorder %s16_s17, %s233_s22  ;;  %s18_s19 = int_to_ptr.vmem [resolvable:$true] %s17_s19 }
   0x4   :  { %s211_s25 = scalar_lea.hbm %s337_s0, 3328  ;;  %p212_p1 = scmp.lt.u32.totalorder %s16_s17, %s337_s0 }
   0x5   :  { %p213_p2 = scmp.lt.u32.totalorder %s211_s25, %s233_s22  ;;  %p215_p4 = scmp.lt.u32.totalorder %s233_s22, %s16_s17 }
   0x7   :  { %p214_p3 = por %p213_p2, %p212_p1 }
   0x9   :  { %p216_p5 = por %p215_p4, %p214_p3 }
   0xb   :  { %p217_p6 = pnand %p216_p5, %p210_p0 }
   0xd   :  { %220 = shalt.err (!%p217_p6)
}
   0xe   :  { %s221_s28 = scalar_lea.vmem %s18_s19, 256  ;;  %p226_p8 = scmp.lt.s32.totalorder %s18_s19, %s18_s19 }
   0xf   :  { %p222_p7 = scmp.ne.s32.totalorder %s18_s19, %s221_s28  ;;  %p227_p9 = scmp.lt.s32.totalorder %s221_s28, %s221_s28 }
  0x11   :  { %p228_p10 = por %p227_p9, %p226_p8 }
  0x13   :  { %p229_p11 = pnand %p228_p10, %p222_p7 }
  0x15   :  { %232 = shalt.err (!%p229_p11)
}
  0x16   :  { %s264_s29 = smov 128   ;;  %s265_s30 = smov 8  }
  0x17   :  { %23 = dma.hbm_to_vmem [thread:$0]  %s16_s17, 256, %s18_s19, [#allocation3], %s264_s29, %s264_s29, %s265_s30  }
  0x18   :  { %s29_s0 = scalar_lea.hbm %s338_s1, 2560  ;;  %s266_s7 = smov [#allocation4]  }
  0x19   :  { %s30_s8 = sshll.u32 %s266_s7, 4  ;;  %s258_s11 = scalar_lea.hbm %s338_s1, 2816  ;;  %s31_s8 = int_to_ptr.vmem [resolvable:$true] %s30_s8 }
  0x1a   :  { %p235_p12 = scmp.ne.s32.totalorder %s29_s0, %s258_s11  ;;  %s236_s14 = scalar_lea.hbm %s338_s1, 3328 }
  0x1b   :  { %p237_p13 = scmp.lt.u32.totalorder %s29_s0, %s338_s1  ;;  %p238_p0 = scmp.lt.u32.totalorder %s236_s14, %s258_s11 }
  0x1c   :  { %p240_p2 = scmp.lt.u32.totalorder %s258_s11, %s29_s0 }
  0x1d   :  { %p239_p1 = por %p238_p0, %p237_p13 }
  0x1f   :  { %p241_p3 = por %p240_p2, %p239_p1 }
  0x21   :  { %p242_p4 = pnand %p241_p3, %p235_p12 }
  0x23   :  { %245 = shalt.err (!%p242_p4)
}
  0x24   :  { %s246_s17 = scalar_lea.vmem %s31_s8, 256  ;;  %p251_p6 = scmp.lt.s32.totalorder %s31_s8, %s31_s8 }
  0x25   :  { %p247_p5 = scmp.ne.s32.totalorder %s31_s8, %s246_s17  ;;  %p252_p7 = scmp.lt.s32.totalorder %s246_s17, %s246_s17 }
  0x27   :  { %p253_p8 = por %p252_p7, %p251_p6 }
  0x29   :  { %p254_p9 = pnand %p253_p8, %p247_p5 }
  0x2b   :  { %257 = shalt.err (!%p254_p9)
}
  0x2c   :  { %36 = dma.hbm_to_vmem [thread:$0]  %s29_s0, 256, %s31_s8, [#allocation5], %s264_s29, %s264_s29, %s265_s30  }
  0x2d   :  { %259 = dma.done.wait [#allocation3], 256  }
  0x2e   :  { %260 = vsyncadd [#allocation3], 4294967040 }
  0x2f   :  { %261 = dma.done.wait [#allocation5], 256  }
  0x30   :  { %262 = vsyncadd [#allocation5], 4294967040  ;;  %v53_v0 = vld [vmem:[%s339_s2] sm:$0xff]  ;;  %v54_v1 = vld [vmem:[%s339_s2 + $0x8] sm:$0xff]  ;;  %vm64_vm0 = vcmask 261120   ;;  %vm158_vm1 = vcmask 31744  }
  0x31   :  { %v55_v2 = vld [vmem:[%s339_s2 + $0x10] sm:$0xff]  ;;  %v189_v3 = vpack.c.bf16 %v54_v1, %v53_v0  ;;  %v56_v4 = vld [vmem:[%s339_s2 + $0x18] sm:$0xff]  ;;  %v47_v5 = vld [vmem:[#allocation2] sm:$0xff] }
  0x32   :  { %v49_v6 = vld [vmem:[#allocation4] sm:$0xff]  ;;  %v193_v7 = vpack.c.bf16 %v56_v4, %v55_v2  ;;  %v48_v9 = vld [vmem:[#allocation2 + $0x8] sm:$0xff]  ;;  %v50_v10 = vld [vmem:[#allocation4 + $0x8] sm:$0xff] }
  0x33   :  { %v51_v8 = vadd.f32 %v49_v6, %v47_v5  ;;  %190 = vmatprep.subr.bf16.mxu0 %v189_v3  ;;  %v52_v11 = vadd.f32 %v50_v10, %v48_v9  ;;  %v167_v12 = vld [vmem:[%s340_s3] ss:$0 sm:$0xff] }
  0x34   :  { %192 = vmatpush3.bf16.msra.mxu0 %v189_v3 }
  0x35   :  { %186 = vmatprep.mubr.msk.f32.mxu0 %vm64_vm0, %v51_v8  ;;  %194 = vmatprep.subr.bf16.mxu0 %v193_v7 }
  0x38   :  { %196 = vmatpush3.bf16.msra.mxu0 %v193_v7 }
  0x3b   :  { %187 = vmatmul.mubr.msk.f32.vlgmr.msra.gmra.mrb[0].mxu0 %vm64_vm0, %v52_v11 }
 0x10e   :  { %v188_v13 = vpop.f32.mrb[0].mxu0 }
 0x10f   :  { %v143_v14 = vadd.f32 %v188_v13, %v167_v12  ;;  %v137_v15 = vpop.f32.mrb[1].mxu0 }
 0x110   :  { %v138_v16 = vadd.f32 %v167_v12, %v137_v15 }
 0x111   :  { %v171_v17 = vmul.f32 -1.442695, %v143_v14 }
 0x112   :  { %v170_v18 = vmul.f32 -1.442695, %v138_v16 }
 0x113   :  { %201 = vpow2.f32 %v171_v17 }
 0x114   :  { %203 = vpow2.f32 %v170_v18 }
 0x11d   :  { %v202_v19 = vpop.eup %201 }
 0x11e   :  { %v204_v20 = vpop.eup %203  ;;  %v153_v21 = vadd.f32 1.0, %v202_v19 }
 0x11f   :  { %v152_v22 = vadd.f32 1.0, %v204_v20 }
 0x120   :  { %205 = vrcp.f32 %v153_v21 }
 0x121   :  { %207 = vrcp.f32 %v152_v22 }
 0x12a   :  { %v206_v23 = vpop.eup %205 }
 0x12b   :  { %v208_v24 = vpop.eup %207  ;;  %160 = vst.msk [vmem:[%s341_s4 + $0x8] sm:$0xff] %vm158_vm1, %v206_v23 }
 0x12c   :  { %159 = vst.msk [vmem:[%s341_s4] sm:$0xff] %vm158_vm1, %v208_v24 }
 0x12d   :  { %165 = vsyncpa [#allocation3], 1 }
 0x12e   :  { %166 = vsyncpa [#allocation5], 1 }

</bundles_post_ra>
